<compile_context>
chip_gen: v5e
topology: v5e:2x2
jax: 0.10.0
libtpu: 0.0.40
codegen_flags: <defaults>
</compile_context>

<pallas_src>
import jax
import jax.numpy as jnp
from jax.experimental import pallas as pl
from jax.experimental.pallas import tpu as pltpu


def _outconv_kernel(x_ref, w_ref, b_ref, o_ref):
    """y = W @ x + b over the channel axis; spatial axis is lane-dense.

    x_ref: (C_in, TS)   w_ref: (C_out, C_in)   b_ref: (C_out, 1)   o_ref: (C_out, TS)
    """
    c_out, c_in = w_ref.shape
    b = b_ref[...].astype(jnp.float32)                     # (C_out, 1)
    if c_in * c_out <= 64:
        # Tiny channel mix: a handful of broadcast FMAs on the VPU.  The MXU
        # would be <1% utilized here and its result-FIFO pop just adds latency
        # (kernel is HBM-bound anyway).  Bias is folded into the first FMA.
        x = x_ref[...].astype(jnp.float32)                 # (C_in, TS)
        w = w_ref[...].astype(jnp.float32)                 # (C_out, C_in)
        acc = b + w[:, 0:1] * x[0:1, :]
        for ci in range(1, c_in):
            acc = acc + w[:, ci:ci + 1] * x[ci:ci + 1, :]
    else:
        # General path: MXU matmul with f32 accumulation.
        acc = jnp.dot(w_ref[...], x_ref[...],
                      preferred_element_type=jnp.float32) + b
    o_ref[...] = acc.astype(o_ref.dtype)


def outconv_forward(x_ncdhw, weight, bias, *, tile_s=4096, compute_dtype=None,
                    vmem_budget_bytes=24 * 1024 * 1024):
    """1x1x1 Conv3d (OutConv) forward.

    x_ncdhw: (N, C_in, D, H, W)
    weight:  (C_out, C_in, 1, 1, 1)   (PyTorch Conv3d weight layout)
    bias:    (C_out,)
    compute_dtype: optional dtype (e.g. jnp.bfloat16) for x/W inside the
                   kernel; accumulation stays f32, output keeps input dtype.
    returns: (N, C_out, D, H, W)
    """
    N, C_in, D, H, W = x_ncdhw.shape
    C_out = weight.shape[0]
    S = D * H * W
    out_dtype = x_ncdhw.dtype

    # Channels-first flattened views: reshapes only, no HBM transpose copies.
    x3 = x_ncdhw.reshape(N, C_in, S)
    w_mat = weight.reshape(C_out, C_in)
    b_col = bias.reshape(C_out, 1)

    if compute_dtype is not None:
        x3 = x3.astype(compute_dtype)
        w_mat = w_mat.astype(compute_dtype)

    in_elt = jnp.dtype(x3.dtype).itemsize
    out_elt = jnp.dtype(out_dtype).itemsize

    # Spatial tile: either the full extent (when small) or the largest
    # lane-dense (multiple of 128) tile that fits both the requested tile_s
    # and the double-buffered VMEM budget.  Ragged last block -> Pallas masks.
    per_s_bytes = 2 * (C_in * in_elt + C_out * out_elt)     # in+out, double buf
    ts_cap = max(128, (vmem_budget_bytes // per_s_bytes) // 128 * 128)
    ts_req = max(128, (tile_s // 128) * 128)
    ts = S if S <= min(ts_req, ts_cap) else min(ts_req, ts_cap)
    grid = (N, pl.cdiv(S, ts))

    cost = pl.CostEstimate(
        flops=2 * N * S * C_in * C_out,
        transcendentals=0,
        bytes_accessed=(N * C_in * S * in_elt           # activations in
                        + C_out * C_in * in_elt         # weight
                        + C_out * 4                     # bias (f32)
                        + N * C_out * S * out_elt),     # activations out
    )

    y3 = pl.pallas_call(
        _outconv_kernel,
        out_shape=jax.ShapeDtypeStruct((N, C_out, S), out_dtype),
        grid_spec=pltpu.PrefetchScalarGridSpec(
            num_scalar_prefetch=0,
            grid=grid,
            in_specs=[
                # Batch dim squeezed out of the kernel ref; spatial dim is the
                # (lane-dense) tiled axis.
                pl.BlockSpec((None, C_in, ts), lambda n, s: (n, 0, s)),
                # Weight / bias: constant index_map -> stay resident in VMEM.
                pl.BlockSpec((C_out, C_in), lambda n, s: (0, 0)),
                pl.BlockSpec((C_out, 1), lambda n, s: (0, 0)),
            ],
            out_specs=pl.BlockSpec((None, C_out, ts), lambda n, s: (n, 0, s)),
        ),
        compiler_params=pltpu.CompilerParams(
            dimension_semantics=("parallel", "parallel"),
            # Headroom for large tiles / channel counts; stays under the
            # v7x 64 MiB physical VMEM per TensorCore.
            vmem_limit_bytes=48 * 1024 * 1024,
        ),
        cost_estimate=cost,
    )(x3, w_mat, b_col)

    return y3.reshape(N, C_out, D, H, W)


if __name__ == "__main__":
    key = jax.random.PRNGKey(0)
    k_x, k_w, k_b = jax.random.split(key, 3)

    N, C_in, C_out, D, H, W = 2, 4, 3, 8, 8, 8
    x = jax.random.normal(k_x, (N, C_in, D, H, W), dtype=jnp.float32)

    # Deterministic parameter init (PyTorch-style uniform bound 1/sqrt(fan_in))
    fan_in = C_in * 1 * 1 * 1
    bound = 1.0 / (fan_in ** 0.5)
    weight = jax.random.uniform(k_w, (C_out, C_in, 1, 1, 1),
                                minval=-bound, maxval=bound, dtype=jnp.float32)
    bias = jax.random.uniform(k_b, (C_out,),
                              minval=-bound, maxval=bound, dtype=jnp.float32)

    # fp32 path (matches PyTorch fp32 semantics).
    y = outconv_forward(x, weight, bias)
    jax.block_until_ready(y)

    y_ref = (jnp.einsum("ncdhw,oc->nodhw", x, weight.reshape(C_out, C_in))
             + bias.reshape(1, C_out, 1, 1, 1))
    assert y.shape == (N, C_out, D, H, W)
    assert jnp.allclose(y, y_ref, atol=1e-5), "fp32 mismatch vs reference"

    # bf16 fast path (halves HBM traffic on v6e/v7x); precision deliberately
    # looser than the fp32 PyTorch reference, so use a looser tolerance.
    y_bf16 = outconv_forward(x, weight, bias, compute_dtype=jnp.bfloat16)
    jax.block_until_ready(y_bf16)
    assert jnp.allclose(y_bf16, y_ref, atol=5e-2, rtol=5e-2), "bf16 mismatch vs reference"

    print("KERNEL_OK")
</pallas_src>

<mosaic_0001>
module attributes {stable_mosaic.version = 11 : i64} {
  func.func @_outconv_kernel(%arg0: i32, %arg1: i32, %arg2: memref<1x4x512xf32, #tpu.memory_space<vmem>>, %arg3: memref<3x4xf32, #tpu.memory_space<vmem>>, %arg4: memref<3x1xf32, #tpu.memory_space<vmem>>, %arg5: memref<1x3x512xf32, #tpu.memory_space<vmem>>) attributes {dimension_semantics = [#tpu.dimension_semantics<parallel>, #tpu.dimension_semantics<parallel>], iteration_bounds = array<i64: 2, 1>, scalar_prefetch = 0 : i64, scratch_operands = 0 : i64, tpu.core_type = #tpu.core_type<tc>, window_params = [{transform_indices = @transform_0, window_bounds = array<i64: 1, 4, 512>}, {pipeline_mode = #tpu.pipeline_mode<synchronous>, transform_indices = @transform_1, window_bounds = array<i64: 3, 4>}, {pipeline_mode = #tpu.pipeline_mode<synchronous>, transform_indices = @transform_2, window_bounds = array<i64: 3, 1>}, {transform_indices = @transform_3, window_bounds = array<i64: 1, 3, 512>}]} {
    %c0 = arith.constant 0 : index
    %c0_0 = arith.constant 0 : index
    %0 = vector.load %arg4[%c0, %c0_0] : memref<3x1xf32, #tpu.memory_space<vmem>>, vector<3x1xf32>
    %c0_1 = arith.constant 0 : index
    %c0_2 = arith.constant 0 : index
    %c0_3 = arith.constant 0 : index
    %1 = vector.load %arg2[%c0_1, %c0_2, %c0_3] : memref<1x4x512xf32, #tpu.memory_space<vmem>>, vector<1x4x512xf32>
    %2 = vector.shape_cast %1 : vector<1x4x512xf32> to vector<4x512xf32>
    %c0_4 = arith.constant 0 : index
    %c0_5 = arith.constant 0 : index
    %3 = vector.load %arg3[%c0_4, %c0_5] : memref<3x4xf32, #tpu.memory_space<vmem>>, vector<3x4xf32>
    %4 = vector.extract_strided_slice %3 {offsets = [0, 0], sizes = [3, 1], strides = [1, 1]} : vector<3x4xf32> to vector<3x1xf32>
    %5 = vector.extract_strided_slice %2 {offsets = [0, 0], sizes = [1, 512], strides = [1, 1]} : vector<4x512xf32> to vector<1x512xf32>
    %6 = vector.broadcast %4 : vector<3x1xf32> to vector<3x512xf32>
    %7 = vector.broadcast %5 : vector<1x512xf32> to vector<3x512xf32>
    %8 = arith.mulf %6, %7 : vector<3x512xf32>
    %9 = vector.broadcast %0 : vector<3x1xf32> to vector<3x512xf32>
    %10 = arith.addf %9, %8 : vector<3x512xf32>
    %11 = vector.extract_strided_slice %3 {offsets = [0, 1], sizes = [3, 1], strides = [1, 1]} : vector<3x4xf32> to vector<3x1xf32>
    %12 = vector.extract_strided_slice %2 {offsets = [1, 0], sizes = [1, 512], strides = [1, 1]} : vector<4x512xf32> to vector<1x512xf32>
    %13 = vector.broadcast %11 : vector<3x1xf32> to vector<3x512xf32>
    %14 = vector.broadcast %12 : vector<1x512xf32> to vector<3x512xf32>
    %15 = arith.mulf %13, %14 : vector<3x512xf32>
    %16 = arith.addf %10, %15 : vector<3x512xf32>
    %17 = vector.extract_strided_slice %3 {offsets = [0, 2], sizes = [3, 1], strides = [1, 1]} : vector<3x4xf32> to vector<3x1xf32>
    %18 = vector.extract_strided_slice %2 {offsets = [2, 0], sizes = [1, 512], strides = [1, 1]} : vector<4x512xf32> to vector<1x512xf32>
    %19 = vector.broadcast %17 : vector<3x1xf32> to vector<3x512xf32>
    %20 = vector.broadcast %18 : vector<1x512xf32> to vector<3x512xf32>
    %21 = arith.mulf %19, %20 : vector<3x512xf32>
    %22 = arith.addf %16, %21 : vector<3x512xf32>
    %23 = vector.extract_strided_slice %3 {offsets = [0, 3], sizes = [3, 1], strides = [1, 1]} : vector<3x4xf32> to vector<3x1xf32>
    %24 = vector.extract_strided_slice %2 {offsets = [3, 0], sizes = [1, 512], strides = [1, 1]} : vector<4x512xf32> to vector<1x512xf32>
    %25 = vector.broadcast %23 : vector<3x1xf32> to vector<3x512xf32>
    %26 = vector.broadcast %24 : vector<1x512xf32> to vector<3x512xf32>
    %27 = arith.mulf %25, %26 : vector<3x512xf32>
    %28 = arith.addf %22, %27 : vector<3x512xf32>
    %c0_6 = arith.constant 0 : index
    %c0_7 = arith.constant 0 : index
    %c0_8 = arith.constant 0 : index
    %29 = vector.load %arg5[%c0_6, %c0_7, %c0_8] : memref<1x3x512xf32, #tpu.memory_space<vmem>>, vector<1x3x512xf32>
    %30 = vector.shape_cast %29 : vector<1x3x512xf32> to vector<3x512xf32>
    %31 = vector.shape_cast %28 : vector<3x512xf32> to vector<1x3x512xf32>
    tpu.vector_store %arg5[%c0_6, %c0_7, %c0_8], %31 {strides = array<i32>} : memref<1x3x512xf32, #tpu.memory_space<vmem>>, vector<1x3x512xf32>,
    return
  }
  func.func @transform_0(%arg0: i32, %arg1: i32) -> (i32, i32, i32) {
    %c0_i32 = arith.constant 0 : i32
    %c0_i32_0 = arith.constant 0 : i32
    return %arg0, %c0_i32, %arg1 : i32, i32, i32
  }
  func.func @transform_1(%arg0: i32, %arg1: i32) -> (i32, i32) {
    %c0_i32 = arith.constant 0 : i32
    %c0_i32_0 = arith.constant 0 : i32
    %c0_i32_1 = arith.constant 0 : i32
    return %c0_i32, %c0_i32_0 : i32, i32
  }
  func.func @transform_2(%arg0: i32, %arg1: i32) -> (i32, i32) {
    %c0_i32 = arith.constant 0 : i32
    %c0_i32_0 = arith.constant 0 : i32
    %c0_i32_1 = arith.constant 0 : i32
    return %c0_i32, %c0_i32_0 : i32, i32
  }
  func.func @transform_3(%arg0: i32, %arg1: i32) -> (i32, i32, i32) {
    %c0_i32 = arith.constant 0 : i32
    %c0_i32_0 = arith.constant 0 : i32
    return %arg0, %c0_i32, %arg1 : i32, i32, i32
  }
}

</mosaic_0001>

<bundles_post_ra>
// kernel: tpu_custom_call.1
= control target key start
LH: loop header
LB: loop body
LE: loop exit
PB: predicated region body
PF: predicated region fallthrough
CT: control target
= control target key end

     0   :  { %8 = vsyncpa [#allocation3], 0  ;;  %s716_s0 = inlined_call_operand.hbm [shape: f32[2,4,512], index: 0, kind: input, shape index: {}]   ;;  %s717_s1 = inlined_call_operand.vmem [shape: f32[3,4], index: 1, kind: input, shape index: {}]   ;;  %s718_s2 = inlined_call_operand.vmem [shape: f32[3,1], index: 2, kind: input, shape index: {}]   ;;  %s719_s3 = inlined_call_operand.vmem [shape: f32[2,3,512], index: 3, kind: output, shape index: {}]  }
   0x1   :  { %10 = vsyncpa [#allocation3 + $0x1], 0  ;;  %s620_s12 = smov 0   ;;  %s622_s13 = smov 0  }
   0x2   :  { %s624_s14 = smov 0   ;;  %s626_s15 = smov 0  }
   0x3   :  { %s628_s16 = smov 0   ;;  %s630_s17 = smov 0  }
   0x4 LB: > { %s435_s18 = sadd.s32 4294967295, %s594_s17   ;;  %s28_s19 = sadd.s32 1, %s590_s16  ;;  %s594_s17 = sphi %s630_s17, %s16_s17   ;;  %s590_s16 = sphi %s628_s16, %s726_s16   ;;  %s586_s15 = sphi %s626_s15, %s725_s15   ;;  %s582_s14 = sphi %s624_s14, %s724_s14   ;;  %s578_s13 = sphi %s622_s13, %s723_s13   ;;  %s574_s12 = sphi %s620_s12, %s722_s12  }
   0x5   : > { %p30_p0 = scmp.ge.s32.totalorder %s28_s19, 2  ;;  %s37_s20 = sadd.s32 1, %s582_s14 }
   0x6   : > { %p44_p1 = scmp.ne.s32.totalorder %s582_s14, %s578_s13  ;;  %p45_p2 = scmp.eq.s32.totalorder %s594_s17, 0 }
   0x7   : > { %s728_s19 = smov (%p30_p0, %s28_s19), 0  ;;  %p50_p4 = scmp.ne.s32.totalorder %s578_s13, %s574_s12 }
   0x8   : > { %p656_p3 = por %p45_p2, %p44_p1  ;;  %s32_s22 = ssub.s32 %s590_s16, %s728_s19 }
   0x9   : > { %p51_p5 = scmp.eq.s32.totalorder %s435_s18, 0  ;;  %p35_p6 = scmp.eq.s32.totalorder %s32_s22, 0 }
   0xa   : > { %p456_p8 = scmp.lt.s32.totalorder %s594_s17, 2  ;;  %s150_s25 = sand.u32 1, %s582_s14  }
   0xb   : > { %p663_p7 = por %p51_p5, %p50_p4  ;;  %s448_s26 = sshll.u32 %s590_s16, 4 }
   0xc   : > { %s669_s24 = scalar_select %p35_p6, %s582_s14, %s37_s20  }
   0xd   : > { %s439_s27 = sshll.u32 %s150_s25, 4  ;;  %s161_s30 = scalar_lea.hbm %s716_s0, %s448_s26 }
   0xe   : > { %s163_s4 = sshll.u32 %s161_s30, 4  ;;  %s154_s5 = scalar_lea.vmem [#allocation2], %s439_s27  ;;  %s164_s4 = int_to_ptr.hbm [resolvable:$true] %s163_s4 }
   0xf   : > { %s165_s6 = sshll.u32 %s154_s5, 4  ;;  %p453_p9 = pnand %p456_p8, %p656_p3  ;;  %s166_s6 = int_to_ptr.vmem [resolvable:$true] %s165_s6 }
  0x10   : > { %p442_p10 = scmp.ge.s32.totalorder %s594_s17, 1  ;;  %p170_p11 = scmp.lt.s32.totalorder %s594_s17, 3 }
  0x11   : > { %s151_s7 = scalar_lea.sflag [#allocation3], %s150_s25 }
  0x12   : > { %455 = dma.hbm_to_vmem [thread:$0]  (!%p453_p9), %s164_s4, 256, %s166_s6, %s151_s7  }
  0x13   : > { %p171_p12 = pnand %p442_p10, %p170_p11 }
  0x14   : > { %s176_s8 = sand.u32 (!%p171_p12), 1, %s578_s13  }
  0x15   : > { %174 = sbr.rel (%p171_p12) target bundleno = 166 (0xa6), region = 32  ;;  %s443_s9 = sshll.u32 (!%p171_p12), %s176_s8, 4 }
  0x16   : > { %s177_s10 = scalar_lea.sflag (!%p171_p12), [#allocation3], %s176_s8  ;;  %s180_s11 = scalar_lea.vmem (!%p171_p12), [#allocation2], %s443_s9 }
  0x1a   : > { %569 = dma.done.wait (%p663_p7), %s177_s10, 256  }
  0x1b   : > { %571 = vsyncadd (%p663_p7), %s177_s10, 4294967040  ;;  %v596_v0 = vmov 0   ;;  %v597_v1 = vmov 1   ;;  %v598_v2 = vmov 3   ;;  %v222_v3 = vld [vmem:[%s717_s1] sm:$0x7] }
  0x1c   : > { %509 = vset.pattern.permute.xlu0 %v596_v0  ;;  %510 = vset.pattern.permute.xlu1 %v597_v1  ;;  %v219_v4 = vld [vmem:[%s718_s2] sm:$0x7]  ;;  %v599_v5 = vmov 2   ;;  %v221_v7 = vld [vmem:[%s180_s11 + $0x8] sm:$0xff]  ;;  %p210_p13 = scmp.lt.s32.totalorder %s586_s15, 1  ;;  %vm333_vm0 = vcmask 1043456  }
  0x1d   : > { %512 = vset.pattern.permute.xlu2 %v598_v2  ;;  %225 = vperm.xlu0 %509, %v222_v3   ;;  %v220_v6 = vld [vmem:[%s180_s11] sm:$0xff]  ;;  %v310_v9 = vperm.slane %v221_v7, 7  ;;  %v232_v12 = vperm.slane %v221_v7, 0  ;;  %v233_v13 = vperm.slane %v221_v7, 4  ;;  %v261_v18 = vperm.slane %v221_v7, 1 }
  0x1e   : > { %256 = vperm.xlu1 %510, %v222_v3   ;;  %304 = vperm.xlu2 %512, %v222_v3   ;;  %v308_v8 = vperm.slane %v220_v6, 7  ;;  %v230_v10 = vperm.slane %v220_v6, 0  ;;  %v231_v11 = vperm.slane %v220_v6, 4  ;;  %v259_v16 = vperm.slane %v220_v6, 1  ;;  %s730_s15 = smov (!%p210_p13, %s586_s15), 1 }
  0x1f   : > { %v260_v17 = vperm.slane %v220_v6, 5  ;;  %v262_v19 = vperm.slane %v221_v7, 5  ;;  %v283_v20 = vperm.slane %v220_v6, 2  ;;  %v284_v21 = vperm.slane %v220_v6, 6  ;;  %s449_s22 = sshll.u32 %s730_s15, 4 }
  0x20   : > { %v285_v22 = vperm.slane %v221_v7, 2  ;;  %v286_v23 = vperm.slane %v221_v7, 6  ;;  %v307_v24 = vperm.slane %v220_v6, 3  ;;  %v309_v25 = vperm.slane %v221_v7, 3  ;;  %s217_s26 = scalar_lea.vmem %s719_s3, %s449_s22 }
  0x21   : > { %v316_v26 = vperm.slane %v308_v8, 3  ;;  %v318_v27 = vperm.slane %v310_v9, 3  ;;  %v238_v28 = vperm.slane %v230_v10, 0  ;;  %v239_v29 = vperm.slane %v231_v11, 0 }
  0x22   : > { %v240_v30 = vperm.slane %v232_v12, 0  ;;  %v241_v31 = vperm.slane %v233_v13, 0  ;;  %v267_v33 = vperm.slane %v259_v16, 1  ;;  %v268_v34 = vperm.slane %v260_v17, 1 }
  0x23   : > { %v269_v35 = vperm.slane %v261_v18, 1  ;;  %v270_v36 = vperm.slane %v262_v19, 1  ;;  %v291_v37 = vperm.slane %v283_v20, 2  ;;  %v292_v38 = vperm.slane %v284_v21, 2 }
  0x24   : > { %v293_v39 = vperm.slane %v285_v22, 2  ;;  %v294_v40 = vperm.slane %v286_v23, 2  ;;  %v315_v41 = vperm.slane %v307_v24, 3  ;;  %v317_v42 = vperm.slane %v309_v25, 3 }
  0x25   : > { %248 = vperm.xlu0 %509, %v219_v4  }
  0x26   : > { %511 = vset.pattern.permute.xlu1 %v599_v5 }
  0x27   : > { %280 = vperm.xlu1 %511, %v222_v3  }
  0x2d   : > { %513 = vset.pattern.permute.xlu0 %v598_v2 }
  0x78   : > { %v305_v32 = vpop.permute.xlu2 %304 }
  0x79   : > { %v320_v43 = vmul.f32 %v316_v26, %v305_v32  ;;  %v322_v44 = vmul.f32 %v318_v27, %v305_v32  ;;  %v319_v3 = vmul.f32 %v315_v41, %v305_v32  ;;  %v321_v4 = vmul.f32 %v317_v42, %v305_v32 }
  0x8f   : > { %v226_v14 = vpop.permute.xlu0 %225 }
  0x90   : > { %v257_v15 = vpop.permute.xlu1 %256  ;;  %v242_v45 = vmul.f32 %v238_v28, %v226_v14  ;;  %v243_v46 = vmul.f32 %v239_v29, %v226_v14  ;;  %v244_v47 = vmul.f32 %v240_v30, %v226_v14  ;;  %v245_v48 = vmul.f32 %v241_v31, %v226_v14 }
  0x91   : > { %v271_v49 = vmul.f32 %v267_v33, %v257_v15  ;;  %v272_v50 = vmul.f32 %v268_v34, %v257_v15  ;;  %v273_v51 = vmul.f32 %v269_v35, %v257_v15  ;;  %v274_v52 = vmul.f32 %v270_v36, %v257_v15 }
  0x97   : > { %v249_v53 = vpop.permute.xlu0 %248 }
  0x98   : > { %v251_v54 = vadd.f32 %v249_v53, %v242_v45  ;;  %v252_v55 = vadd.f32 %v249_v53, %v243_v46  ;;  %v253_v56 = vadd.f32 %v249_v53, %v244_v47  ;;  %v254_v57 = vadd.f32 %v249_v53, %v245_v48 }
  0x99   : > { %v281_v58 = vpop.permute.xlu1 %280 }
  0x9a   : > { %v295_v59 = vmul.f32 %v291_v37, %v281_v58  ;;  %v296_v60 = vmul.f32 %v292_v38, %v281_v58  ;;  %v297_v61 = vmul.f32 %v293_v39, %v281_v58  ;;  %v298_v62 = vmul.f32 %v294_v40, %v281_v58 }
  0x9b   : > { %v275_v63 = vadd.f32 %v271_v49, %v251_v54  ;;  %v276_v0 = vadd.f32 %v272_v50, %v252_v55  ;;  %v277_v1 = vadd.f32 %v273_v51, %v253_v56  ;;  %v278_v2 = vadd.f32 %v274_v52, %v254_v57 }
  0x9d   : > { %v299_v5 = vadd.f32 %v295_v59, %v275_v63  ;;  %v300_v6 = vadd.f32 %v296_v60, %v276_v0  ;;  %v301_v7 = vadd.f32 %v297_v61, %v277_v1  ;;  %v302_v8 = vadd.f32 %v298_v62, %v278_v2 }
  0x9f   : > { %v324_v9 = vadd.f32 %v320_v43, %v300_v6  ;;  %v326_v10 = vadd.f32 %v322_v44, %v302_v8  ;;  %v323_v11 = vadd.f32 %v319_v3, %v299_v5  ;;  %v325_v12 = vadd.f32 %v321_v4, %v301_v7 }
  0xa1   : > { %v331_v13 = vrot.slane %v324_v9, 4  ;;  %v332_v14 = vrot.slane %v326_v10, 4 }
  0xa3   : > { %v334_v15 = vsel %vm333_vm0, %v323_v11, %v331_v13  ;;  %v335_v16 = vsel %vm333_vm0, %v325_v12, %v332_v14 }
  0xa4   : > { %338 = vst [vmem:[%s217_s26] sm:$0x77] %v334_v15 }
  0xa5   : > { %339 = vst [vmem:[%s217_s26 + $0x8] sm:$0x77] %v335_v16 }
  0xa6 PF: > { %s16_s17 = sadd.s32 1, %s594_s17   ;;  %s722_s12 = smov %s578_s13 }
  0xa7   : > { %p13_p0 = scmp.ge.s32.totalorder %s16_s17, 4   ;;  %s723_s13 = smov %s582_s14 }
  0xa8   : > { %s724_s14 = smov %s669_s24  ;;  %s725_s15 = smov %s590_s16 }
  0xa9   : > { %s726_s16 = smov %s728_s19  ;;  %15 = sbr.rel (!%p13_p0) target bundleno = 4 (0x4), region = 72 }
  0xae   :  { %370 = vsyncpa [#allocation3], 1 }
  0xaf   :  { %372 = vsyncpa [#allocation3 + $0x1], 1 }

</bundles_post_ra>
